<compile_context>
chip_gen: v7x
topology: tpu7x:2x2x1
jax: 0.10.0
libtpu: 0.0.40
codegen_flags: <defaults>
</compile_context>

<pallas_src>
import functools

import jax
import jax.numpy as jnp
from jax.experimental import pallas as pl
from jax.experimental.pallas import tpu as pltpu


def _pick_tile(dim, pref):
    """Pick a block size for `dim`.

    - Small or non-128-aligned dims (toy shapes): a single full block, which
      satisfies the "(8,128)-divisible OR equal-to-full-dim" tiling rule.
    - Otherwise: the largest divisor of `dim` that is <= `pref`, preferring
      multiples of 256 (v6e/v7x MXU is 2x256x256), then multiples of 128
      (enough for v5e's 4x128x128 MXU).  This keeps the reduction axis
      actually pipelined at real shapes (e.g. K=1152 -> 384, not 1152).
    """
    if dim <= pref or dim % 128 != 0:
        return dim
    for quantum in (256, 128):
        t = (pref // quantum) * quantum
        while t >= quantum:
            if dim % t == 0:
                return t
            t -= quantum
    return dim  # unreachable when dim % 128 == 0


# ----------------------------------------------------------------------------
# Tiled linear, optionally with a fused LayerNorm epilogue
# ----------------------------------------------------------------------------

def _linear_kernel(*refs, fuse_ln, eps):
    if fuse_ln:
        x_ref, w_ref, b_ref, g_ref, bb_ref, o_ref, acc_ref = refs
    else:
        x_ref, w_ref, b_ref, o_ref, acc_ref = refs

    k = pl.program_id(2)

    @pl.when(k == 0)
    def _():
        acc_ref[...] = jnp.zeros_like(acc_ref)

    # bf16 operands straight into the MXU, f32 accumulation in VMEM scratch.
    acc_ref[...] += jnp.dot(x_ref[...], w_ref[...],
                            preferred_element_type=jnp.float32)

    @pl.when(k == pl.num_programs(2) - 1)
    def _():
        # Bias (and optional LayerNorm) only once, in the finalize branch.
        acc = acc_ref[...] + b_ref[...].astype(jnp.float32)
        if fuse_ln:
            mean = jnp.mean(acc, axis=-1, keepdims=True)
            var = jnp.mean((acc - mean) ** 2, axis=-1, keepdims=True)
            acc = (acc - mean) * jax.lax.rsqrt(var + eps)
            acc = (acc * g_ref[...].astype(jnp.float32)
                   + bb_ref[...].astype(jnp.float32))
        o_ref[...] = acc.astype(o_ref.dtype)


def linear(x, w, b, *, gamma=None, beta=None, eps=1e-5,
           out_dtype=jnp.bfloat16, tm=256, tn=512, tk=512):
    """y = x @ w + b, optionally followed by LayerNorm over the last dim.

    x: [M, K], w: [K, N], b: [N] -> [M, N].
    """
    M, K = x.shape
    K2, N = w.shape
    assert K == K2
    fuse_ln = gamma is not None
    if fuse_ln:
        # The LayerNorm epilogue reduces over the full hidden dim, so the N
        # axis must be a single block.
        tn = N
    tm = _pick_tile(M, tm)
    tn = _pick_tile(N, tn)
    tk = _pick_tile(K, tk)
    grid = (M // tm, N // tn, K // tk)

    in_specs = [
        pl.BlockSpec((tm, tk), lambda i, j, k: (i, k)),
        pl.BlockSpec((tk, tn), lambda i, j, k: (k, j)),
        pl.BlockSpec((1, tn), lambda i, j, k: (0, j)),
    ]
    args = [x, w, b.reshape(1, N)]
    if fuse_ln:
        in_specs += [pl.BlockSpec((1, tn), lambda i, j, k: (0, j)),
                     pl.BlockSpec((1, tn), lambda i, j, k: (0, j))]
        args += [gamma.reshape(1, N), beta.reshape(1, N)]

    return pl.pallas_call(
        functools.partial(_linear_kernel, fuse_ln=fuse_ln, eps=eps),
        out_shape=jax.ShapeDtypeStruct((M, N), out_dtype),
        grid=grid,
        in_specs=in_specs,
        out_specs=pl.BlockSpec((tm, tn), lambda i, j, k: (i, j)),
        scratch_shapes=[pltpu.VMEM((tm, tn), jnp.float32)],
        compiler_params=pltpu.CompilerParams(
            dimension_semantics=("parallel", "parallel", "arbitrary")),
    )(*args)


# ----------------------------------------------------------------------------
# Batched, double-buffered embedding gather with fused LayerNorm
# ----------------------------------------------------------------------------

def _embed_ln_kernel(ids_ref, table_hbm, g_ref, b_ref, o_ref,
                     buf, sem, *, rows, eps):
    i = pl.program_id(0)
    n = pl.num_programs(0)
    slot = i % 2

    def issue(step, to_slot):
        base = step * rows
        for r in range(rows):                       # static unroll; ids in SMEM
            tok = ids_ref[base + r]
            pltpu.make_async_copy(table_hbm.at[tok],
                                  buf.at[to_slot, r],
                                  sem.at[to_slot, r]).start()

    # Prime the pipeline on the first grid step.
    @pl.when(i == 0)
    def _():
        issue(0, 0)

    # Prefetch next step's rows into the other slot while this step computes.
    @pl.when(i + 1 < n)
    def _():
        issue(i + 1, 1 - slot)

    # Wait for this step's rows (descriptors rebuilt with matching shapes).
    for r in range(rows):
        pltpu.make_async_copy(table_hbm.at[0], buf.at[slot, r],
                              sem.at[slot, r]).wait()

    # Fused LayerNorm over the gathered rows (torch nn.LayerNorm semantics).
    x = buf[slot].astype(jnp.float32)
    mean = jnp.mean(x, axis=-1, keepdims=True)
    var = jnp.mean((x - mean) ** 2, axis=-1, keepdims=True)
    y = (x - mean) * jax.lax.rsqrt(var + eps)
    y = y * g_ref[...].astype(jnp.float32) + b_ref[...].astype(jnp.float32)
    o_ref[...] = y.astype(o_ref.dtype)


def embed_tokens_ln(table, ids, gamma, beta, *, eps=1e-5, rows=32):
    """table: [V, D] (HBM), ids: [M] int32 -> LayerNorm(table[ids]) : [M, D]."""
    V, D = table.shape
    M = ids.shape[0]
    n_steps = pl.cdiv(M, rows)
    M_pad = n_steps * rows
    if M_pad != M:
        ids = jnp.concatenate([ids, jnp.zeros((M_pad - M,), dtype=ids.dtype)])

    grid_spec = pltpu.PrefetchScalarGridSpec(
        num_scalar_prefetch=1,
        grid=(n_steps,),
        in_specs=[
            pl.BlockSpec(memory_space=pl.ANY),            # table stays in HBM
            pl.BlockSpec((1, D), lambda i, ids: (0, 0)),  # gamma
            pl.BlockSpec((1, D), lambda i, ids: (0, 0)),  # beta
        ],
        out_specs=pl.BlockSpec((rows, D), lambda i, ids: (i, 0)),
        scratch_shapes=[pltpu.VMEM((2, rows, D), table.dtype),
                        pltpu.SemaphoreType.DMA((2, rows))],
    )
    out = pl.pallas_call(
        functools.partial(_embed_ln_kernel, rows=rows, eps=eps),
        out_shape=jax.ShapeDtypeStruct((M_pad, D), table.dtype),
        grid_spec=grid_spec,
        # The cross-step double-buffer carries DMA state between grid steps,
        # so this axis must stay "arbitrary".
        # TODO(synk): per-core pipeline priming would allow "parallel" here so
        # v7x's two TensorCores can split the token axis.
        compiler_params=pltpu.CompilerParams(
            dimension_semantics=("arbitrary",)),
    )(ids, table, gamma.reshape(1, D), beta.reshape(1, D))
    return out[:M] if M_pad != M else out


# ----------------------------------------------------------------------------
# Model wrapper (parameter setup + forward glue)
# ----------------------------------------------------------------------------

class PaliGemmaFineTunePallas:
    """Synthetic, small-scale stand-in for PaliGemmaFineTune.forward.

    Params (deterministic init from PRNGKey(0)):
      vision patch-embed : [C*p*p (padded to %128), Dv], [Dv]  (stand-in tower)
      multi_modal_proj   : [Dv, D],     [D]          (trainable in the module)
      embed_tokens table : [V, D]                    (trainable in the module)
      new_layer_norm     : gamma=[D]=1, beta=[D]=0   (torch default init)
    """

    def __init__(self, *, channels=3, patch=8, vision_hidden=16,
                 lm_hidden=32, vocab=128, dtype=jnp.bfloat16):
        self.channels = channels
        self.patch = patch
        self.vision_hidden = vision_hidden
        self.lm_hidden = lm_hidden
        self.vocab = vocab
        self.dtype = dtype
        self.ln_eps = 1e-5

        key = jax.random.PRNGKey(0)
        k1, k2, k3, k4, k5 = jax.random.split(key, 5)
        patch_dim = channels * patch * patch
        self.patch_dim = patch_dim
        # Pad the patch-embed K dim up to a multiple of 128: zero rows in w /
        # zero cols in x are numerically identical and keep all MXU tiles full.
        self.patch_dim_pad = ((patch_dim + 127) // 128) * 128
        w = 0.02 * jax.random.normal(k1, (patch_dim, vision_hidden))
        if self.patch_dim_pad != patch_dim:
            w = jnp.concatenate(
                [w, jnp.zeros((self.patch_dim_pad - patch_dim, vision_hidden))],
                axis=0)
        self.vision_w = w.astype(dtype)
        self.vision_b = (0.02 * jax.random.normal(k2, (vision_hidden,))).astype(dtype)
        self.proj_w = (0.02 * jax.random.normal(k3, (vision_hidden, lm_hidden))).astype(dtype)
        self.proj_b = (0.02 * jax.random.normal(k4, (lm_hidden,))).astype(dtype)
        self.embed_table = (0.02 * jax.random.normal(k5, (vocab, lm_hidden))).astype(dtype)
        self.ln_gamma = jnp.ones((lm_hidden,), dtype)
        self.ln_beta = jnp.zeros((lm_hidden,), dtype)

    def _patchify(self, pixel_values):
        # layout: NCHW -> [B, n_patches, C*p*p], patches in row-major NCHW order.
        B, C, H, W = pixel_values.shape
        p = self.patch
        x = pixel_values.reshape(B, C, H // p, p, W // p, p)
        x = x.transpose(0, 2, 4, 1, 3, 5)          # B, Hp, Wp, C, p, p
        return x.reshape(B, (H // p) * (W // p), C * p * p)

    def forward(self, pixel_values, input_ids, attention_mask, labels=None):
        B = pixel_values.shape[0]
        D = self.lm_hidden

        # --- vision tower (stand-in: single Pallas patch-embedding linear) ---
        # TODO(synk): full SigLIP vision tower (attention blocks) is a
        # pretrained black box and is not reproduced here.
        # Cast to bf16 *before* patchify so the XLA reshape/transpose pass and
        # the first matmul's input DMA move half the bytes.
        patches = self._patchify(pixel_values.astype(self.dtype))
        n_img = patches.shape[1]
        x = patches.reshape(B * n_img, self.patch_dim)
        if self.patch_dim_pad != self.patch_dim:
            x = jnp.pad(x, ((0, 0), (0, self.patch_dim_pad - self.patch_dim)))
        vision_hidden = linear(x, self.vision_w, self.vision_b,
                               out_dtype=self.dtype, tm=512)         # [B*P, Dv]

        # --- multi_modal_projector (trainable Linear) + fused new_layer_norm.
        # LayerNorm is per-token over the hidden dim, so applying it here and
        # in the text path is identical to LN(concat(image, text)).
        # tm=128 keeps M//tm >= 2 at real shapes (both v7x cores get work) and
        # bounds the fused-LN working set under v5e's scoped-VMEM default.
        image_embeds = linear(vision_hidden, self.proj_w, self.proj_b,
                              gamma=self.ln_gamma, beta=self.ln_beta,
                              eps=self.ln_eps, out_dtype=self.dtype,
                              tm=128, tk=512)
        image_embeds = image_embeds.reshape(B, n_img, D)

        # --- embed_tokens (trainable embedding lookup) + fused LayerNorm ---
        T = input_ids.shape[1]
        text_embeds = embed_tokens_ln(
            self.embed_table, input_ids.reshape(-1).astype(jnp.int32),
            self.ln_gamma, self.ln_beta, eps=self.ln_eps, rows=32)
        text_embeds = text_embeds.reshape(B, T, D)

        # --- concat (already LayerNorm-ed on both sides) ---
        inputs_embeds = jnp.concatenate((image_embeds, text_embeds), axis=1)

        # --- attention mask / labels concat (glue) ---
        image_attention_mask = jnp.ones((B, n_img), dtype=jnp.int32)
        combined_attention_mask = jnp.concatenate(
            (image_attention_mask, attention_mask.astype(jnp.int32)), axis=1)
        if labels is not None:
            image_labels_ignore = jnp.full((B, n_img), -100, dtype=jnp.int32)
            combined_labels = jnp.concatenate(
                (image_labels_ignore, labels.astype(jnp.int32)), axis=1)
        else:
            combined_labels = None

        # TODO(synk): the frozen Gemma language model (28-layer decoder) is a
        # pretrained black box; we return the LayerNorm-ed inputs_embeds plus
        # the combined mask/labels that would be fed into it.
        return {
            "inputs_embeds": inputs_embeds,
            "attention_mask": combined_attention_mask,
            "labels": combined_labels,
        }


# ----------------------------------------------------------------------------
# Driver
# ----------------------------------------------------------------------------

if __name__ == "__main__":
    B, C, H, W = 2, 3, 16, 16
    T = 8

    model = PaliGemmaFineTunePallas(
        channels=C, patch=8, vision_hidden=16, lm_hidden=32, vocab=128)

    key = jax.random.PRNGKey(0)
    kp, ki, kl = jax.random.split(key, 3)
    pixel_values = jax.random.normal(kp, (B, C, H, W), dtype=jnp.float32)
    input_ids = jax.random.randint(ki, (B, T), 0, model.vocab, dtype=jnp.int32)
    attention_mask = jnp.ones((B, T), dtype=jnp.int32)
    labels = jax.random.randint(kl, (B, T), 0, model.vocab, dtype=jnp.int32)

    out = model.forward(pixel_values, input_ids, attention_mask, labels)
    jax.block_until_ready(out["inputs_embeds"])
    jax.block_until_ready(out["attention_mask"])
    jax.block_until_ready(out["labels"])

    # Basic shape sanity (image seq = 4 patches, text seq = 8 -> total 12).
    assert out["inputs_embeds"].shape == (B, 4 + T, 32)
    assert out["attention_mask"].shape == (B, 4 + T)
    assert out["labels"].shape == (B, 4 + T)
    assert out["inputs_embeds"].dtype == jnp.bfloat16

    print("KERNEL_OK")
</pallas_src>

<mosaic_0001>
module attributes {stable_mosaic.version = 11 : i64} {
  func.func @_linear_kernel(%arg0: i32, %arg1: i32, %arg2: i32, %arg3: memref<8x256xbf16, #tpu.memory_space<vmem>>, %arg4: memref<256x16xbf16, #tpu.memory_space<vmem>>, %arg5: memref<1x16xbf16, #tpu.memory_space<vmem>>, %arg6: memref<8x16xbf16, #tpu.memory_space<vmem>>, %arg7: memref<8x16xf32, #tpu.memory_space<vmem>>) attributes {dimension_semantics = [#tpu.dimension_semantics<parallel>, #tpu.dimension_semantics<parallel>, #tpu.dimension_semantics<arbitrary>], iteration_bounds = array<i64: 1, 1, 1>, scalar_prefetch = 0 : i64, scratch_operands = 1 : i64, tpu.core_type = #tpu.core_type<tc>, window_params = [{transform_indices = @transform_0, window_bounds = array<i64: 8, 256>}, {transform_indices = @transform_1, window_bounds = array<i64: 256, 16>}, {transform_indices = @transform_2, window_bounds = array<i64: 1, 16>}, {transform_indices = @transform_3, window_bounds = array<i64: 8, 16>}]} {
    %c0_i32 = arith.constant 0 : i32
    %0 = arith.cmpi eq, %arg2, %c0_i32 : i32
    %1 = arith.extui %0 : i1 to i32
    %c0_i32_0 = arith.constant 0 : i32
    %2 = arith.cmpi ne, %1, %c0_i32_0 : i32
    scf.if %2 {
      %cst_10 = arith.constant 0.000000e+00 : f32
      %12 = vector.broadcast %cst_10 : f32 to vector<8x16xf32>
      %c0_11 = arith.constant 0 : index
      %c0_12 = arith.constant 0 : index
      %13 = vector.load %arg7[%c0_11, %c0_12] : memref<8x16xf32, #tpu.memory_space<vmem>>, vector<8x16xf32>
      tpu.vector_store %arg7[%c0_11, %c0_12], %12 {strides = array<i32>} : memref<8x16xf32, #tpu.memory_space<vmem>>, vector<8x16xf32>,
    } else {
    }
    %c0 = arith.constant 0 : index
    %c0_1 = arith.constant 0 : index
    %3 = vector.load %arg7[%c0, %c0_1] : memref<8x16xf32, #tpu.memory_space<vmem>>, vector<8x16xf32>
    %c0_2 = arith.constant 0 : index
    %c0_3 = arith.constant 0 : index
    %4 = vector.load %arg3[%c0_2, %c0_3] : memref<8x256xbf16, #tpu.memory_space<vmem>>, vector<8x256xbf16>
    %c0_4 = arith.constant 0 : index
    %c0_5 = arith.constant 0 : index
    %5 = vector.load %arg4[%c0_4, %c0_5] : memref<256x16xbf16, #tpu.memory_space<vmem>>, vector<256x16xbf16>
    %cst = arith.constant dense<0.000000e+00> : vector<8x16xf32>
    %6 = tpu.matmul %4, %5, %cst {dimension_numbers = #tpu.dot_dimension_numbers<[1], [0], [0], [1], [0, 0, 1, 1], [], []>} : vector<8x256xbf16>, vector<256x16xbf16>, vector<8x16xf32> -> vector<8x16xf32>
    %7 = arith.addf %3, %6 : vector<8x16xf32>
    %c0_6 = arith.constant 0 : index
    %c0_7 = arith.constant 0 : index
    %8 = vector.load %arg7[%c0_6, %c0_7] : memref<8x16xf32, #tpu.memory_space<vmem>>, vector<8x16xf32>
    tpu.vector_store %arg7[%c0_6, %c0_7], %7 {strides = array<i32>} : memref<8x16xf32, #tpu.memory_space<vmem>>, vector<8x16xf32>,
    %c0_i32_8 = arith.constant 0 : i32
    %9 = arith.cmpi eq, %arg2, %c0_i32_8 : i32
    %10 = arith.extui %9 : i1 to i32
    %c0_i32_9 = arith.constant 0 : i32
    %11 = arith.cmpi ne, %10, %c0_i32_9 : i32
    scf.if %11 {
      %c0_10 = arith.constant 0 : index
      %c0_11 = arith.constant 0 : index
      %12 = vector.load %arg7[%c0_10, %c0_11] : memref<8x16xf32, #tpu.memory_space<vmem>>, vector<8x16xf32>
      %c0_12 = arith.constant 0 : index
      %c0_13 = arith.constant 0 : index
      %13 = vector.load %arg5[%c0_12, %c0_13] : memref<1x16xbf16, #tpu.memory_space<vmem>>, vector<1x16xbf16>
      %14 = arith.extf %13 : vector<1x16xbf16> to vector<1x16xf32>
      %15 = vector.broadcast %14 : vector<1x16xf32> to vector<8x16xf32>
      %16 = arith.addf %12, %15 : vector<8x16xf32>
      %17 = arith.truncf %16 : vector<8x16xf32> to vector<8x16xbf16>
      %c0_14 = arith.constant 0 : index
      %c0_15 = arith.constant 0 : index
      %18 = vector.load %arg6[%c0_14, %c0_15] : memref<8x16xbf16, #tpu.memory_space<vmem>>, vector<8x16xbf16>
      tpu.vector_store %arg6[%c0_14, %c0_15], %17 {strides = array<i32>} : memref<8x16xbf16, #tpu.memory_space<vmem>>, vector<8x16xbf16>,
    } else {
    }
    return
  }
  func.func @transform_0(%arg0: i32, %arg1: i32, %arg2: i32) -> (i32, i32) {
    %c0_i32 = arith.constant 0 : i32
    return %arg0, %arg2 : i32, i32
  }
  func.func @transform_1(%arg0: i32, %arg1: i32, %arg2: i32) -> (i32, i32) {
    %c0_i32 = arith.constant 0 : i32
    return %arg2, %arg1 : i32, i32
  }
  func.func @transform_2(%arg0: i32, %arg1: i32, %arg2: i32) -> (i32, i32) {
    %c0_i32 = arith.constant 0 : i32
    %c0_i32_0 = arith.constant 0 : i32
    return %c0_i32, %arg1 : i32, i32
  }
  func.func @transform_3(%arg0: i32, %arg1: i32, %arg2: i32) -> (i32, i32) {
    %c0_i32 = arith.constant 0 : i32
    return %arg0, %arg1 : i32, i32
  }
}

</mosaic_0001>

<bundles_post_ra>
// kernel: tpu_custom_call.1
= control target key start
LH: loop header
LB: loop body
LE: loop exit
PB: predicated region body
PF: predicated region fallthrough
CT: control target
= control target key end

     0   :  { %s402_s0 = inlined_call_operand.vmem [shape: bf16[8,256], index: 0, kind: input, shape index: {}]   ;;  %s403_s1 = inlined_call_operand.vmem [shape: bf16[256,16], index: 1, kind: input, shape index: {}]   ;;  %s404_s2 = inlined_call_operand.vmem [shape: bf16[1,16], index: 2, kind: input, shape index: {}]   ;;  %s405_s3 = inlined_call_operand.hbm [shape: bf16[8,16], index: 3, kind: output, shape index: {}]  }
   0x1   :  { %v272_v0 = vld [vmem:[%s403_s1 + $0x40] sm:$0xff]   ;;  %v274_v2 = vld [vmem:[%s403_s1 + $0x48] sm:$0xff]   ;;  %v276_v4 = vld [vmem:[%s403_s1 + $0x50] sm:$0xff]  }
   0x2   :  { %v273_v1 = vld [vmem:[%s403_s1] sm:$0xff]   ;;  %248 = vmatprep.subr.bf16.mxu0 %v272_v0  ;;  %v275_v3 = vld [vmem:[%s403_s1 + $0x8] sm:$0xff]   ;;  %v277_v5 = vld [vmem:[%s403_s1 + $0x10] sm:$0xff]  }
   0x3   :  { %249 = vmatpush3.bf16.msra.mxu0 %v273_v1  ;;  %v278_v6 = vld [vmem:[%s403_s1 + $0x58] sm:$0xff]   ;;  %v280_v8 = vld [vmem:[%s403_s1 + $0x60] sm:$0xff]   ;;  %v282_v10 = vld [vmem:[%s403_s1 + $0x68] sm:$0xff]  }
   0x4   :  { %250 = vmatprep.subr.bf16.mxu0 %v274_v2  ;;  %v279_v7 = vld [vmem:[%s403_s1 + $0x18] sm:$0xff]   ;;  %v281_v9 = vld [vmem:[%s403_s1 + $0x20] sm:$0xff]  }
   0x5   :  { %v23_v11 = vld [vmem:[%s402_s0] sm:$0xff] }
   0x7   :  { %251 = vmatpush3.bf16.msra.mxu0 %v275_v3 }
   0x8   :  { %252 = vmatprep.subr.bf16.mxu0 %v276_v4 }
   0xb   :  { %253 = vmatpush3.bf16.msra.mxu0 %v277_v5 }
   0xc   :  { %254 = vmatprep.subr.bf16.mxu0 %v278_v6 }
   0xf   :  { %255 = vmatpush3.bf16.msra.mxu0 %v279_v7 }
  0x10   :  { %256 = vmatprep.subr.bf16.mxu0 %v280_v8 }
  0x11   :  { %8 = vsyncpa [#allocation4], 0  ;;  %v231_v12 = vcombine.high %v23_v11, %v23_v11  ;;  %v283_v13 = vld [vmem:[%s403_s1 + $0x28] sm:$0xff]   ;;  %v284_v14 = vld [vmem:[%s403_s1 + $0x70] sm:$0xff]   ;;  %v230_v18 = vcombine.low %v23_v11, %v23_v11  ;;  %vm20_vm0 = vcmask 130048   ;;  %v314_v19 = vmov 0.0  }
  0x12   :  { %v285_v15 = vld [vmem:[%s403_s1 + $0x30] sm:$0xff]   ;;  %v286_v16 = vld [vmem:[%s403_s1 + $0x78] sm:$0xff]   ;;  %21 = vst.msk [vmem:[#allocation2] sm:$0xff] %vm20_vm0, %v314_v19  ;;  %v208_v20 = vlaneseq  ;;  %v206_v28 = vld [vmem:[%s404_s2] sm:$0x1]  ;;  %vm214_vm1 = vcmask 125952  }
  0x13   :  { %257 = vmatpush3.bf16.msra.mxu0 %v281_v9  ;;  %191 = vmatprep.mubr.bf16.mxu0 %v231_v12  ;;  %v287_v17 = vld [vmem:[%s403_s1 + $0x38] sm:$0xff]   ;;  %v207_v30 = vunpack.c.l.bf16 %v206_v28  ;;  %s315_s1 = smov [#allocation3]  }
  0x14   :  { %258 = vmatprep.subr.bf16.mxu0 %v282_v10  ;;  %v209_v26 = vshrl.u32 %v208_v20, 7  ;;  %s222_s20 = sshll.u32 %s315_s1, 4  ;;  %s223_s20 = int_to_ptr.vmem [resolvable:$true] %s222_s20 }
  0x15   :  { %s290_s21 = scalar_lea.vmem %s223_s20, 64  ;;  %p295_p1 = scmp.lt.s32.totalorder %s223_s20, %s223_s20 }
  0x16   :  { %v210_v31 = vsub.s32 0, %v209_v26  ;;  %p291_p0 = scmp.ne.s32.totalorder %s223_s20, %s290_s21  ;;  %p296_p2 = scmp.lt.s32.totalorder %s290_s21, %s290_s21 }
  0x17   :  { %259 = vmatpush3.bf16.msra.mxu0 %v283_v13 }
  0x18   :  { %260 = vmatprep.subr.bf16.mxu0 %v284_v14  ;;  %v211_v32 = vrot.slane %v207_v30, %v210_v31  ;;  %p297_p3 = por %p296_p2, %p295_p1 }
  0x19   :  { %v22_v22 = vld [vmem:[#allocation2] sm:$0xff] }
  0x1a   :  { %p298_p4 = pnand %p297_p3, %p291_p0 }
  0x1b   :  { %261 = vmatpush3.bf16.msra.mxu0 %v285_v15 }
  0x1c   :  { %262 = vmatprep.subr.bf16.mxu0 %v286_v16 }
  0x1f   :  { %263 = vmatpush3.bf16.msra.mxu0 %v287_v17 }
  0x22   :  { %192 = vmatmul.mubr.bf16.vlgmr.msra.gmra.mrb[0].mxu0 %v230_v18 }
  0xf5   :  { %v264_v21 = vpop.f32.mrb[0].mxu0 }
  0xf6   :  { %v265_v23 = vpop.f32.mrb[1].mxu0 }
  0xf7   :  { %v266_v24 = vadd.f32 %v265_v23, %v264_v21  ;;  %v267_v25 = vpop.f32.mrb[2].mxu0 }
  0xf8   :  { %v268_v27 = vpop.f32.mrb[3].mxu0 }
  0xf9   :  { %v199_v29 = vadd.f32 %v266_v24, %v22_v22 }
  0xfb   :  { %201 = vst.msk [vmem:[#allocation2] sm:$0xff] %vm20_vm0, %v199_v29 }
 0x102   :  { %v205_v33 = vld [vmem:[#allocation2] sm:$0xff] }
 0x103   :  { %v212_v34 = vadd.f32 %v211_v32, %v205_v33 }
 0x105   :  { %v213_v35 = vpack.c.bf16 %v212_v34, %v212_v34 }
 0x107   :  { %215 = vst.msk [vmem:[#allocation3] sm:$0xf] %vm214_vm1, %v213_v35 }
 0x108   :  { %301 = shalt.err (!%p298_p4)
}
 0x109   :  { %s302_s23 = scalar_lea.hbm %s405_s3, 64 }
 0x10a   :  { %p303_p5 = scmp.ne.s32.totalorder %s405_s3, %s302_s23  ;;  %p306_p6 = scmp.lt.u32.totalorder %s302_s23, %s405_s3 }
 0x10c   :  { %p308_p7 = pnand %p306_p6, %p303_p5 }
 0x10e   :  { %311 = shalt.err (!%p308_p7)
}
 0x10f   :  { %225 = dma.vmem_to_hbm [thread:$0]  %s223_s20, 64, %s405_s3, [#allocation4]  }
 0x110   :  { %312 = dma.done.wait [#allocation4], 64  }
 0x111   :  { %313 = vsyncadd [#allocation4], 4294967232 }
 0x112   :  { %229 = vsyncpa [#allocation4], 1 }

</bundles_post_ra>
